<compile_context>
chip_gen: v5e
topology: v5e:2x2
jax: 0.10.0
libtpu: 0.0.40
codegen_flags: <defaults>
</compile_context>

<pallas_src>
import jax
import jax.numpy as jnp
from jax.experimental import pallas as pl
from jax.experimental.pallas import tpu as pltpu

INPUT_VECTOR_SIZE = 1
HIDDEN_LAYER_SIZE = 1
OUTPUT_VECTOR_SIZE = 2

LANES = 128                 # batch elements per lane-row
MAX_BLOCK_ROWS = 2048       # 2048 rows: 1 MiB in + 2 MiB out per buffer (f32)
MIN_BLOCK_ROWS = 16         # satisfies (8,128) f32 and (16,128) bf16 tiling
JNP_FALLBACK_MAX_BATCH = 1024  # below this the Pallas call buys nothing


def dqn_kernel(params_ref, x_ref, o_ref):
    # params_ref: (6,) f32 in SMEM = [w1, b1, w2_0, w2_1, b2_0, b2_1]
    # x_ref:      (block_rows, 128) in VMEM, batch laid along lanes
    # o_ref:      (2, block_rows, 128) in VMEM, o_ref[0]=Q0, o_ref[1]=Q1
    w1 = params_ref[0]
    b1 = params_ref[1]
    w2_0 = params_ref[2]
    w2_1 = params_ref[3]
    b2_0 = params_ref[4]
    b2_1 = params_ref[5]

    x = x_ref[...].astype(jnp.float32)        # f32 compute regardless of I/O dtype
    h = jnp.tanh(x * w1 + b1)                 # VPU mul/add + EUP tanh, no MXU
    o_ref[0, :, :] = (h * w2_0 + b2_0).astype(o_ref.dtype)   # lane-dense stores
    o_ref[1, :, :] = (h * w2_1 + b2_1).astype(o_ref.dtype)


def _choose_block_rows(rows, max_block_rows):
    # Largest block (capped) that covers the batch in as few grid steps as
    # possible without gross over-padding of small batches.
    cap = max(MIN_BLOCK_ROWS, min(int(max_block_rows), MAX_BLOCK_ROWS))
    return int(min(cap, max(MIN_BLOCK_ROWS, pl.next_power_of_2(int(rows)))))


def _out_dtype_for(x):
    return x.dtype if jnp.issubdtype(x.dtype, jnp.floating) else jnp.float32


def _jnp_slab(x, params, out_dtype):
    # Tiny-batch / B==0 path: plain jnp, no kernel launch or layout plumbing.
    xf = x.reshape(-1).astype(jnp.float32)
    h = jnp.tanh(xf * params[0] + params[1])
    q0 = h * params[2] + params[4]
    q1 = h * params[3] + params[5]
    return jnp.stack([q0, q1], axis=0).astype(out_dtype)   # (2, B)


def dqn_forward_slab(x, params, *, max_block_rows=MAX_BLOCK_ROWS):
    """x: (B, 1). params: (6,) f32. Returns Q-values as a (2, B) slab
    (lane-major; the kernel's native, transpose-free layout)."""
    B = x.shape[0]
    out_dtype = _out_dtype_for(x)

    if B <= JNP_FALLBACK_MAX_BATCH:
        return _jnp_slab(x, params, out_dtype)

    rows = pl.cdiv(B, LANES)
    block_rows = _choose_block_rows(rows, max_block_rows)
    rows_padded = block_rows * pl.cdiv(rows, block_rows)
    n_padded = rows_padded * LANES

    # Lane-dense slab: batch along lanes. Only pad when actually needed
    # (jnp.pad copies the whole input, which matters on a mem-bound pipeline).
    x_flat = x.reshape(-1)
    if not jnp.issubdtype(x_flat.dtype, jnp.floating):
        x_flat = x_flat.astype(jnp.float32)
    if n_padded != B:
        x_flat = jnp.pad(x_flat, (0, n_padded - B))
    x2d = x_flat.reshape(rows_padded, LANES)

    grid = (rows_padded // block_rows,)
    itemsize_in = jnp.dtype(x2d.dtype).itemsize
    itemsize_out = jnp.dtype(out_dtype).itemsize

    out = pl.pallas_call(
        dqn_kernel,
        out_shape=jax.ShapeDtypeStruct((OUTPUT_VECTOR_SIZE, rows_padded, LANES),
                                       out_dtype),
        grid=grid,
        in_specs=[
            # Scalar parameters ride the SMEM / scalar path (no VMEM DMA).
            pl.BlockSpec(memory_space=pltpu.SMEM),
            # Lane-dense activation tile.
            pl.BlockSpec((block_rows, LANES), lambda i: (i, 0)),
        ],
        out_specs=pl.BlockSpec((OUTPUT_VECTOR_SIZE, block_rows, LANES),
                               lambda i: (0, i, 0)),
        compiler_params=pltpu.CompilerParams(
            dimension_semantics=("parallel",),
        ),
        cost_estimate=pl.CostEstimate(
            flops=6 * n_padded,
            transcendentals=n_padded,
            bytes_accessed=n_padded * (itemsize_in + 2 * itemsize_out),
        ),
    )(params, x2d)

    q = out.reshape(OUTPUT_VECTOR_SIZE, -1)        # (2, n_padded), free bitcast
    if n_padded != B:
        q = q[:, :B]
    return q


def dqn_forward(x, params, *, max_block_rows=MAX_BLOCK_ROWS):
    """PyTorch-compatible entry point: x (B, 1) -> (B, 2).
    NOTE: the final (2,B)->(B,2) transpose is a wrapper-side XLA op that
    re-streams the whole output; throughput consumers should use
    dqn_forward_slab() (or fuse their consumer) instead."""
    return dqn_forward_slab(x, params, max_block_rows=max_block_rows).T


def init_params(key):
    # Deterministic PyTorch-style init: U(-1/sqrt(fan_in), +1/sqrt(fan_in)).
    k1, k2, k3, k4 = jax.random.split(key, 4)
    bound1 = 1.0 / (INPUT_VECTOR_SIZE ** 0.5)
    bound2 = 1.0 / (HIDDEN_LAYER_SIZE ** 0.5)
    # Stored as (in, out) = transpose of PyTorch's (out, in) weight layout.
    w1 = jax.random.uniform(k1, (INPUT_VECTOR_SIZE, HIDDEN_LAYER_SIZE),
                            jnp.float32, -bound1, bound1)
    b1 = jax.random.uniform(k2, (1, HIDDEN_LAYER_SIZE),
                            jnp.float32, -bound1, bound1)
    w2 = jax.random.uniform(k3, (HIDDEN_LAYER_SIZE, OUTPUT_VECTOR_SIZE),
                            jnp.float32, -bound2, bound2)
    b2 = jax.random.uniform(k4, (1, OUTPUT_VECTOR_SIZE),
                            jnp.float32, -bound2, bound2)
    return w1, b1, w2, b2


def pack_params(w1, b1, w2, b2):
    # [w1, b1, w2_0, w2_1, b2_0, b2_1] as a single SMEM-friendly f32 vector.
    return jnp.concatenate([
        w1.reshape(-1), b1.reshape(-1), w2.reshape(-1), b2.reshape(-1)
    ]).astype(jnp.float32)


if __name__ == "__main__":
    key = jax.random.PRNGKey(0)
    pkey, xkey = jax.random.split(key)
    w1, b1, w2, b2 = init_params(pkey)
    params = pack_params(w1, b1, w2, b2)

    def ref_fn(x):
        return jnp.tanh(x @ w1 + b1) @ w2 + b2

    # Coverage:
    #   (8, default)      -> tiny-batch jnp fallback path
    #   (2053, default)   -> kernel, single large block, ragged-tail padding
    #   (4096, block=16)  -> kernel, multi-step grid, NO wrapper pad (aligned)
    #   (2053, block=16)  -> kernel, multi-step grid + padding
    cases = [
        (8, {}),
        (2053, {}),
        (4096, {"max_block_rows": 16}),
        (2053, {"max_block_rows": 16}),
    ]

    ok = True
    for idx, (batch, kw) in enumerate(cases):
        xk = jax.random.fold_in(xkey, idx)
        x = jax.random.normal(xk, (batch, INPUT_VECTOR_SIZE), jnp.float32)

        out = jax.block_until_ready(dqn_forward(x, params, **kw))
        ref = ref_fn(x)
        ok &= out.shape == (batch, OUTPUT_VECTOR_SIZE)
        ok &= bool(jnp.allclose(out, ref, atol=1e-5, rtol=1e-5))

        # Also validate the transpose-free slab layout on the kernel path.
        slab = jax.block_until_ready(dqn_forward_slab(x, params, **kw))
        ok &= slab.shape == (OUTPUT_VECTOR_SIZE, batch)
        ok &= bool(jnp.allclose(slab.T, ref, atol=1e-5, rtol=1e-5))

    assert ok
    print("KERNEL_OK")
</pallas_src>

<mosaic_0001>
module attributes {stable_mosaic.version = 11 : i64} {
  func.func @dqn_kernel(%arg0: i32, %arg1: memref<6xf32, #tpu.memory_space<smem>>, %arg2: memref<32x128xf32, #tpu.memory_space<vmem>>, %arg3: memref<2x32x128xf32, #tpu.memory_space<vmem>>) attributes {dimension_semantics = [#tpu.dimension_semantics<parallel>], iteration_bounds = array<i64: 1>, scalar_prefetch = 0 : i64, scratch_operands = 0 : i64, tpu.core_type = #tpu.core_type<tc>, window_params = [{transform_indices = @transform_0, window_bounds = array<i64: 6>}, {transform_indices = @transform_1, window_bounds = array<i64: 32, 128>}, {transform_indices = @transform_2, window_bounds = array<i64: 2, 32, 128>}]} {
    %c0 = arith.constant 0 : index
    %0 = memref.load %arg1[%c0] : memref<6xf32, #tpu.memory_space<smem>>
    %c1 = arith.constant 1 : index
    %1 = memref.load %arg1[%c1] : memref<6xf32, #tpu.memory_space<smem>>
    %c2 = arith.constant 2 : index
    %2 = memref.load %arg1[%c2] : memref<6xf32, #tpu.memory_space<smem>>
    %c3 = arith.constant 3 : index
    %3 = memref.load %arg1[%c3] : memref<6xf32, #tpu.memory_space<smem>>
    %c4 = arith.constant 4 : index
    %4 = memref.load %arg1[%c4] : memref<6xf32, #tpu.memory_space<smem>>
    %c5 = arith.constant 5 : index
    %5 = memref.load %arg1[%c5] : memref<6xf32, #tpu.memory_space<smem>>
    %c0_0 = arith.constant 0 : index
    %c0_1 = arith.constant 0 : index
    %6 = vector.load %arg2[%c0_0, %c0_1] : memref<32x128xf32, #tpu.memory_space<vmem>>, vector<32x128xf32>
    %7 = vector.broadcast %0 : f32 to vector<32x128xf32>
    %8 = arith.mulf %6, %7 : vector<32x128xf32>
    %9 = vector.broadcast %1 : f32 to vector<32x128xf32>
    %10 = arith.addf %8, %9 : vector<32x128xf32>
    %11 = math.tanh %10 : vector<32x128xf32>
    %12 = vector.broadcast %2 : f32 to vector<32x128xf32>
    %13 = arith.mulf %11, %12 : vector<32x128xf32>
    %14 = vector.broadcast %4 : f32 to vector<32x128xf32>
    %15 = arith.addf %13, %14 : vector<32x128xf32>
    %c0_2 = arith.constant 0 : index
    %c0_3 = arith.constant 0 : index
    %c0_4 = arith.constant 0 : index
    %16 = vector.load %arg3[%c0_2, %c0_3, %c0_4] : memref<2x32x128xf32, #tpu.memory_space<vmem>>, vector<1x32x128xf32>
    %17 = vector.shape_cast %16 : vector<1x32x128xf32> to vector<32x128xf32>
    %18 = vector.shape_cast %15 : vector<32x128xf32> to vector<1x32x128xf32>
    tpu.vector_store %arg3[%c0_2, %c0_3, %c0_4], %18 {strides = array<i32>} : memref<2x32x128xf32, #tpu.memory_space<vmem>>, vector<1x32x128xf32>,
    %19 = vector.broadcast %3 : f32 to vector<32x128xf32>
    %20 = arith.mulf %11, %19 : vector<32x128xf32>
    %21 = vector.broadcast %5 : f32 to vector<32x128xf32>
    %22 = arith.addf %20, %21 : vector<32x128xf32>
    %c1_5 = arith.constant 1 : index
    %c0_6 = arith.constant 0 : index
    %c0_7 = arith.constant 0 : index
    %23 = vector.load %arg3[%c1_5, %c0_6, %c0_7] : memref<2x32x128xf32, #tpu.memory_space<vmem>>, vector<1x32x128xf32>
    %24 = vector.shape_cast %23 : vector<1x32x128xf32> to vector<32x128xf32>
    %25 = vector.shape_cast %22 : vector<32x128xf32> to vector<1x32x128xf32>
    tpu.vector_store %arg3[%c1_5, %c0_6, %c0_7], %25 {strides = array<i32>} : memref<2x32x128xf32, #tpu.memory_space<vmem>>, vector<1x32x128xf32>,
    return
  }
  func.func @transform_0(%arg0: i32) -> i32 {
    %c0_i32 = arith.constant 0 : i32
    %c0_i32_0 = arith.constant 0 : i32
    return %c0_i32 : i32
  }
  func.func @transform_1(%arg0: i32) -> (i32, i32) {
    %c0_i32 = arith.constant 0 : i32
    %c0_i32_0 = arith.constant 0 : i32
    return %arg0, %c0_i32 : i32, i32
  }
  func.func @transform_2(%arg0: i32) -> (i32, i32, i32) {
    %c0_i32 = arith.constant 0 : i32
    %c0_i32_0 = arith.constant 0 : i32
    %c0_i32_1 = arith.constant 0 : i32
    return %c0_i32, %arg0, %c0_i32_0 : i32, i32, i32
  }
}

</mosaic_0001>

<bundles_post_ra>
// kernel: tpu_custom_call.1
= control target key start
LH: loop header
LB: loop body
LE: loop exit
PB: predicated region body
PF: predicated region fallthrough
CT: control target
= control target key end

     0   :  { %7 = vsyncpa [#allocation5], 0  ;;  %s233_s0 = inlined_call_operand.hbm [shape: f32[6], index: 0, kind: input, shape index: {}]   ;;  %s234_s1 = inlined_call_operand.hbm [shape: f32[32,128], index: 1, kind: input, shape index: {}]   ;;  %s235_s2 = inlined_call_operand.hbm [shape: f32[2,32,128], index: 2, kind: output, shape index: {}]  }
   0x1   :  { %8 = vsyncpa [#allocation3], 0 }
   0x2   :  { %9 = vsyncpa [#allocation4], 0  ;;  %s15_s11 = sshll.u32 %s233_s0, 4  ;;  %s23_s14 = sshll.u32 %s234_s1, 4  ;;  %s16_s11 = int_to_ptr.hbm [resolvable:$true] %s15_s11  ;;  %s24_s14 = int_to_ptr.hbm [resolvable:$true] %s23_s14 }
   0x3   :  { %s198_s15 = smov [#allocation2]   ;;  %s199_s16 = smov [#allocation6]  }
   0x4   :  { %18 = dma.hbm_to_smem %s16_s11, 16, %s198_s15, [#allocation5]  }
   0x5   :  { %s25_s17 = sshll.u32 %s199_s16, 4  ;;  %s200_s18 = smov 128   ;;  %s26_s17 = int_to_ptr.vmem [resolvable:$true] %s25_s17 }
   0x6   :  { %s201_s19 = smov 8  }
   0x7   :  { %31 = dma.hbm_to_vmem [thread:$0]  %s24_s14, 512, %s26_s17, [#allocation3], %s200_s18, %s200_s18, %s201_s19  }
   0x8   :  { %192 = dma.done.wait [#allocation5], 16  }
   0x9   :  { %193 = vsyncadd [#allocation5], 4294967280 }
   0xa   :  { %194 = dma.done.wait [#allocation3], 512  }
   0xb   :  { %195 = vsyncadd [#allocation3], 4294966784 }
   0xc   :  { %40 = sfence }
   0xd   :  { %s41_s0 = sld [smem:[#allocation2]]  ;;  %v47_v0 = vld [vmem:[#allocation6] sm:$0xff]  ;;  %v48_v1 = vld [vmem:[#allocation6 + $0x8] sm:$0xff]  ;;  %v49_v2 = vld [vmem:[#allocation6 + $0x10] sm:$0xff]  ;;  %s202_s24 = smov [#allocation7]  }
   0xe   :  { %s114_s20 = sld [smem:[#allocation2 + $0x1]]  ;;  %v50_v3 = vld [vmem:[#allocation6 + $0x18] sm:$0xff]  ;;  %s98_s25 = sshll.u32 %s202_s24, 4  ;;  %s99_s25 = int_to_ptr.vmem [resolvable:$true] %s98_s25 }
   0xf   :  { %s115_s1 = sld [smem:[#allocation2 + $0x2]]  ;;  %s100_s28 = sshll.u32 %s235_s2, 4  ;;  %s101_s28 = int_to_ptr.hbm [resolvable:$true] %s100_s28 }
  0x10   :  { %s116_s21 = sld [smem:[#allocation2 + $0x3]] }
  0x11   :  { %s117_s22 = sld [smem:[#allocation2 + $0x4]] }
  0x12   :  { %s118_s23 = sld [smem:[#allocation2 + $0x5]] }
  0x13   :  { %v51_v4 = vstv %s41_s0 }
  0x14   :  { %v52_v5 = vmul.f32 %v51_v4, %v47_v0  ;;  %v56_v6 = vstv %s114_s20  ;;  %v53_v7 = vmul.f32 %v51_v4, %v48_v1  ;;  %v54_v8 = vmul.f32 %v51_v4, %v49_v2 }
  0x15   :  { %v55_v9 = vmul.f32 %v51_v4, %v50_v3  ;;  %v65_v14 = vstv %s115_s1 }
  0x16   :  { %v57_v10 = vadd.f32 %v56_v6, %v52_v5  ;;  %v58_v11 = vadd.f32 %v56_v6, %v53_v7  ;;  %v59_v12 = vadd.f32 %v56_v6, %v54_v8  ;;  %v79_v15 = vstv %s116_s21 }
  0x17   :  { %v60_v13 = vadd.f32 %v56_v6, %v55_v9  ;;  %v70_v17 = vstv %s117_s22 }
  0x18   :  { %124 = vtanh.f32 %v57_v10  ;;  %v84_v23 = vstv %s118_s23 }
  0x19   :  { %126 = vtanh.f32 %v58_v11 }
  0x1a   :  { %128 = vtanh.f32 %v59_v12 }
  0x1b   :  { %130 = vtanh.f32 %v60_v13 }
  0x1e   :  { %v125_v16 = vpop.eup %124 }
  0x1f   :  { %v127_v18 = vpop.eup %126  ;;  %v66_v19 = vmul.f32 %v125_v16, %v65_v14  ;;  %v80_v20 = vmul.f32 %v125_v16, %v79_v15 }
  0x20   :  { %v129_v21 = vpop.eup %128  ;;  %v67_v22 = vmul.f32 %v127_v18, %v65_v14  ;;  %v81_v24 = vmul.f32 %v127_v18, %v79_v15 }
  0x21   :  { %v131_v25 = vpop.eup %130  ;;  %v71_v26 = vadd.f32 %v70_v17, %v66_v19  ;;  %v68_v27 = vmul.f32 %v129_v21, %v65_v14  ;;  %v82_v28 = vmul.f32 %v129_v21, %v79_v15  ;;  %v85_v33 = vadd.f32 %v84_v23, %v80_v20 }
  0x22   :  { %v72_v29 = vadd.f32 %v70_v17, %v67_v22  ;;  %v69_v30 = vmul.f32 %v131_v25, %v65_v14  ;;  %v83_v31 = vmul.f32 %v131_v25, %v79_v15  ;;  %v86_v35 = vadd.f32 %v84_v23, %v81_v24 }
  0x23   :  { %75 = vst [vmem:[#allocation7] sm:$0xff] %v71_v26  ;;  %v73_v32 = vadd.f32 %v70_v17, %v68_v27  ;;  %v87_v36 = vadd.f32 %v84_v23, %v82_v28 }
  0x24   :  { %76 = vst [vmem:[#allocation7 + $0x8] sm:$0xff] %v72_v29  ;;  %v74_v34 = vadd.f32 %v70_v17, %v69_v30  ;;  %v88_v37 = vadd.f32 %v84_v23, %v83_v31 }
  0x25   :  { %77 = vst [vmem:[#allocation7 + $0x10] sm:$0xff] %v73_v32 }
  0x26   :  { %78 = vst [vmem:[#allocation7 + $0x18] sm:$0xff] %v74_v34 }
  0x27   :  { %90 = vst [vmem:[#allocation7 + $0x20] sm:$0xff] %v85_v33 }
  0x28   :  { %91 = vst [vmem:[#allocation7 + $0x28] sm:$0xff] %v86_v35 }
  0x29   :  { %92 = vst [vmem:[#allocation7 + $0x30] sm:$0xff] %v87_v36 }
  0x2a   :  { %93 = vst [vmem:[#allocation7 + $0x38] sm:$0xff] %v88_v37 }
  0x2b   :  { %106 = dma.vmem_to_hbm [thread:$0]  %s99_s25, 1024, %s101_s28, [#allocation4], %s200_s18, %s200_s18, %s201_s19  }
  0x2c   :  { %196 = dma.done.wait [#allocation4], 1024  }
  0x2d   :  { %197 = vsyncadd [#allocation4], 4294966272 }
  0x2e   :  { %111 = vsyncpa [#allocation3], 1 }
  0x2f   :  { %112 = vsyncpa [#allocation4], 1 }
  0x30   :  { %113 = vsyncpa [#allocation5], 1 }

</bundles_post_ra>
